<compile_context>
chip_gen: v7x
topology: tpu7x:2x2x1
jax: 0.10.0
libtpu: 0.0.40
codegen_flags: <defaults>
</compile_context>

<pallas_src>
import jax
import jax.numpy as jnp
from jax import lax
from jax.experimental import pallas as pl
from jax.experimental.pallas import tpu as pltpu

EPS = 1e-5


def _round_up(x, m):
    return (x + m - 1) // m * m


def _largest_divisor(n, cap, multiple_of=1):
    """Largest d <= cap with d | n and multiple_of | d (None if none exists)."""
    best = None
    for d in range(1, min(n, cap) + 1):
        if n % d == 0 and d % multiple_of == 0:
            best = d
    return best


def _tpu_config():
    """Generation-aware VMEM limit / tile targets."""
    try:
        cap = int(pltpu.get_tpu_info().vmem_capacity_bytes)
    except Exception:
        cap = 64 * 1024 * 1024
    if cap >= 100 * 1024 * 1024:
        # v5e / v6e: 128 MiB VMEM, lowest HBM BW -> bigger tiles, deep buffers.
        return dict(vmem_limit=96 * 1024 * 1024, tr_max=1024, rt_target=512)
    # v7x: 64 MiB VMEM -> keep per-step working set modest.
    return dict(vmem_limit=40 * 1024 * 1024, tr_max=512, rt_target=256)


# --------------------------- stage 1 ---------------------------------------
def _stage1_kernel(x_ref, s1_ref, b1_ref, w1_ref, b2_ref, u_ref):
    """bn1 -> relu -> conv1 (1x1, bn2-scale folded) -> +bias -> relu (bf16 out)."""
    xf = x_ref[...].astype(jnp.float32)                 # bf16 HBM, f32 math
    t = jnp.maximum(xf * s1_ref[...] + b1_ref[...], 0.0)
    u = jnp.dot(t.astype(jnp.bfloat16), w1_ref[...],
                preferred_element_type=jnp.float32)
    u_ref[...] = jnp.maximum(u + b2_ref[...], 0.0).astype(u_ref.dtype)


# --------------------------- stage 2 ---------------------------------------
def _make_stage2_kernel(H, W, Wp_s, RH):
    """conv2 (3x3 via 9 shifted flat-halo slices, bn3-scale folded, value
    accumulator) -> +bias -> relu -> conv3 (1x1) -> + residual -> bf16 store.

    Wp_s: halo row stride, padded to a multiple of 8 (sublane-aligned ky taps).
    RH:   image rows per grid band (RH | H), so RB = RH * Wp_s flat rows/band.
    """
    RB = RH * Wp_s

    def kernel(u_ref, res_ref, w2_ref, b3_ref, w3_ref, o_ref, halo_ref):
        band = pl.program_id(1)

        # Build the zero-padded flat halo of u once per image (band 0).
        # Border columns/rows come from the zero fill; the interior is always
        # fully overwritten, so the fill is per-image and core-split safe.
        @pl.when(band == 0)
        def _fill_halo():
            halo_ref[...] = jnp.zeros_like(halo_ref)
            for y in range(H):
                halo_ref[pl.ds((y + 1) * Wp_s + 1, W), :] = u_ref[0, y, :, :]

        base = pl.multiple_of(band * RB, 8)

        # 3x3 conv as 9 shifted GEMMs with a value (register) accumulator.
        acc = jnp.dot(halo_ref[pl.ds(base, RB), :], w2_ref[0],
                      preferred_element_type=jnp.float32)
        for ky in range(3):
            for kx in range(3):
                if ky == 0 and kx == 0:
                    continue
                off = ky * Wp_s + kx
                acc = acc + jnp.dot(halo_ref[pl.ds(base + off, RB), :],
                                    w2_ref[ky * 3 + kx],
                                    preferred_element_type=jnp.float32)

        v = jnp.maximum(acc + b3_ref[...], 0.0).astype(jnp.bfloat16)
        o = jnp.dot(v, w3_ref[...], preferred_element_type=jnp.float32)

        # Scatter flat rows (junk columns dropped) back to NHWC, add residual
        # in f32, store bf16.
        for j in range(RH):
            row = o[j * Wp_s:j * Wp_s + W, :]
            o_ref[0, j, :, :] = (
                row + res_ref[0, j, :, :].astype(jnp.float32)
            ).astype(o_ref.dtype)

    return kernel


# --------------------------- wrapper ----------------------------------------
def preact_bottleneck_forward(x_nchw, params, stride=1):
    assert stride == 1, "downsample=None requires stride=1 (identity residual)"
    N, Cin, H, W = x_nchw.shape
    P = params["conv1_w"].shape[0]          # planes
    Cout = params["conv3_w"].shape[0]       # planes * 4
    assert Cout == Cin, "identity residual needs inplanes == planes * 4"

    cfg = _tpu_config()

    def fold_bn(p):
        g, b, m, v = p
        s = g / jnp.sqrt(v + EPS)
        return s, b - m * s

    s1, b1 = fold_bn(params["bn1"])
    s2, b2 = fold_bn(params["bn2"])
    s3, b3 = fold_bn(params["bn3"])

    # Lane-dense channel padding (multiples of 128); padded channels stay 0.
    Cin_p = _round_up(Cin, 128)
    P_p = _round_up(P, 128)
    Cout_p = Cin_p                           # Cin == Cout

    def pad_last(a, tgt):
        return jnp.pad(a, [(0, 0)] * (a.ndim - 1) + [(0, tgt - a.shape[-1])])

    # --------------- stage 1: row-tiled fused GEMM (bf16 input) -------------
    rows = N * H * W
    if rows % 8 == 0:
        TR = _largest_divisor(rows, cfg["tr_max"], multiple_of=8)
        rows_p = rows
    else:
        TR = min(cfg["tr_max"], _round_up(rows, 8))
        rows_p = _round_up(rows, TR)

    x_nhwc = jnp.transpose(x_nchw, (0, 2, 3, 1))
    # bf16, channel-padded activation: stage-1 input AND stage-2 residual.
    x_pad = pad_last(x_nhwc, Cin_p).astype(jnp.bfloat16)      # (N,H,W,Cin_p)
    x_flat = x_pad.reshape(rows, Cin_p)
    if rows_p > rows:
        x_flat = jnp.pad(x_flat, ((0, rows_p - rows), (0, 0)))

    w1m = params["conv1_w"][:, :, 0, 0].T                      # (Cin, P)
    w1f = jnp.pad(w1m * s2[None, :],
                  ((0, Cin_p - Cin), (0, P_p - P))).astype(jnp.bfloat16)
    s1p = pad_last(s1.reshape(1, Cin), Cin_p)
    b1p = pad_last(b1.reshape(1, Cin), Cin_p)
    b2p = pad_last(b2.reshape(1, P), P_p)

    u_flat = pl.pallas_call(
        _stage1_kernel,
        out_shape=jax.ShapeDtypeStruct((rows_p, P_p), jnp.bfloat16),
        grid=(rows_p // TR,),
        in_specs=[
            pl.BlockSpec((TR, Cin_p), lambda i: (i, 0)),
            pl.BlockSpec((1, Cin_p), lambda i: (0, 0)),
            pl.BlockSpec((1, Cin_p), lambda i: (0, 0)),
            pl.BlockSpec((Cin_p, P_p), lambda i: (0, 0)),
            pl.BlockSpec((1, P_p), lambda i: (0, 0)),
        ],
        out_specs=pl.BlockSpec((TR, P_p), lambda i: (i, 0)),
        compiler_params=pltpu.CompilerParams(
            dimension_semantics=("parallel",),
            vmem_limit_bytes=cfg["vmem_limit"]),
    )(x_flat, s1p, b1p, w1f, b2p)

    # -------- stage 2: in-kernel halo, row-banded, value accumulation -------
    Wp_s = _round_up(W + 2, 8)               # sublane-aligned halo row stride
    RH = _largest_divisor(H, max(1, cfg["rt_target"] // Wp_s)) or 1
    RB = RH * Wp_s
    # Max flat row read: (H-RH)*Wp_s + 2*Wp_s + 2 + RB = (H+2)*Wp_s + 2.
    Lh = _round_up((H + 2) * Wp_s + 2, 8)

    u_nhwc = (u_flat if rows_p == rows else u_flat[:rows]).reshape(N, H, W, P_p)

    # conv2 weights per tap (kH,kW,I,O) with bn3 scale folded into O columns.
    w2t = jnp.transpose(params["conv2_w"], (2, 3, 1, 0))
    w2f = jnp.pad(w2t * s3[None, None, None, :],
                  ((0, 0), (0, 0), (0, P_p - P), (0, P_p - P)))
    w2f = w2f.reshape(9, P_p, P_p).astype(jnp.bfloat16)
    b3p = pad_last(b3.reshape(1, P), P_p)
    w3m = params["conv3_w"][:, :, 0, 0].T                      # (P, Cout)
    w3f = jnp.pad(w3m, ((0, P_p - P), (0, Cout_p - Cout))).astype(jnp.bfloat16)

    out_nhwc = pl.pallas_call(
        _make_stage2_kernel(H, W, Wp_s, RH),
        out_shape=jax.ShapeDtypeStruct((N, H, W, Cout_p), jnp.bfloat16),
        grid=(N, H // RH),
        in_specs=[
            pl.BlockSpec((1, H, W, P_p), lambda n, b: (n, 0, 0, 0)),
            pl.BlockSpec((1, RH, W, Cout_p), lambda n, b: (n, b, 0, 0)),
            pl.BlockSpec((9, P_p, P_p), lambda n, b: (0, 0, 0)),
            pl.BlockSpec((1, P_p), lambda n, b: (0, 0)),
            pl.BlockSpec((P_p, Cout_p), lambda n, b: (0, 0)),
        ],
        out_specs=pl.BlockSpec((1, RH, W, Cout_p), lambda n, b: (n, b, 0, 0)),
        scratch_shapes=[pltpu.VMEM((Lh, P_p), jnp.bfloat16)],
        compiler_params=pltpu.CompilerParams(
            dimension_semantics=("parallel", "arbitrary"),
            vmem_limit_bytes=cfg["vmem_limit"]),
    )(u_nhwc, x_pad, w2f, b3p, w3f)

    out = out_nhwc[:, :, :, :Cout].astype(jnp.float32)
    return jnp.transpose(out, (0, 3, 1, 2))


# --------------------------- reference --------------------------------------
def reference_forward(x_nchw, params, stride=1):
    """Pure-JAX f32 reference (same math as the PyTorch module in eval mode)."""
    def bn(v, p):
        g, b, m, var = p
        return g * (v - m) / jnp.sqrt(var + EPS) + b

    dn = ("NHWC", "HWIO", "NHWC")
    x = jnp.transpose(x_nchw, (0, 2, 3, 1))
    t = jax.nn.relu(bn(x, params["bn1"]))
    w1 = jnp.transpose(params["conv1_w"], (2, 3, 1, 0))
    u = lax.conv_general_dilated(t, w1, (1, 1), "VALID", dimension_numbers=dn)
    u = jax.nn.relu(bn(u, params["bn2"]))
    w2 = jnp.transpose(params["conv2_w"], (2, 3, 1, 0))
    v = lax.conv_general_dilated(u, w2, (stride, stride), ((1, 1), (1, 1)),
                                 dimension_numbers=dn)
    v = jax.nn.relu(bn(v, params["bn3"]))
    w3 = jnp.transpose(params["conv3_w"], (2, 3, 1, 0))
    o = lax.conv_general_dilated(v, w3, (1, 1), "VALID", dimension_numbers=dn)
    o = o + x
    return jnp.transpose(o, (0, 3, 1, 2))


if __name__ == "__main__":
    key = jax.random.PRNGKey(0)
    ks = jax.random.split(key, 8)

    # Small shapes consistent with the module: inplanes must equal planes*4
    # for the identity residual (downsample=None, stride=1).
    N, inplanes, H, W = 2, 16, 8, 8
    planes = 4

    x = jax.random.normal(ks[0], (N, inplanes, H, W), jnp.float32)

    def bn_params(k, c):
        k1, k2, k3, k4 = jax.random.split(k, 4)
        gamma = jax.random.uniform(k1, (c,), jnp.float32, 0.5, 1.5)
        beta = 0.1 * jax.random.normal(k2, (c,), jnp.float32)
        mean = 0.1 * jax.random.normal(k3, (c,), jnp.float32)
        var = jax.random.uniform(k4, (c,), jnp.float32, 0.5, 1.5)
        return gamma, beta, mean, var

    params = dict(
        bn1=bn_params(ks[1], inplanes),
        conv1_w=0.1 * jax.random.normal(ks[2], (planes, inplanes, 1, 1), jnp.float32),
        bn2=bn_params(ks[3], planes),
        conv2_w=0.1 * jax.random.normal(ks[4], (planes, planes, 3, 3), jnp.float32),
        bn3=bn_params(ks[5], planes),
        conv3_w=0.1 * jax.random.normal(ks[6], (planes * 4, planes, 1, 1), jnp.float32),
    )

    out = preact_bottleneck_forward(x, params)
    out = jax.block_until_ready(out)

    ref = reference_forward(x, params)
    assert out.shape == (N, planes * 4, H, W), out.shape
    # bf16 MXU operands + bf16 activation/residual/output storage (f32 adds)
    # -> slightly looser tolerance than pure f32.
    assert jnp.allclose(out, ref, atol=3e-2, rtol=3e-2), \
        float(jnp.max(jnp.abs(out - ref)))

    print("KERNEL_OK")
</pallas_src>

<mosaic_0001>
module attributes {stable_mosaic.version = 11 : i64} {
  func.func @_stage1_kernel(%arg0: i32, %arg1: memref<128x128xbf16, #tpu.memory_space<vmem>>, %arg2: memref<1x128xf32, #tpu.memory_space<vmem>>, %arg3: memref<1x128xf32, #tpu.memory_space<vmem>>, %arg4: memref<128x128xbf16, #tpu.memory_space<vmem>>, %arg5: memref<1x128xf32, #tpu.memory_space<vmem>>, %arg6: memref<128x128xbf16, #tpu.memory_space<vmem>>) attributes {dimension_semantics = [#tpu.dimension_semantics<parallel>], iteration_bounds = array<i64: 1>, scalar_prefetch = 0 : i64, scratch_operands = 0 : i64, tpu.core_type = #tpu.core_type<tc>, window_params = [{transform_indices = @transform_0, window_bounds = array<i64: 128, 128>}, {pipeline_mode = #tpu.pipeline_mode<synchronous>, transform_indices = @transform_1, window_bounds = array<i64: 1, 128>}, {pipeline_mode = #tpu.pipeline_mode<synchronous>, transform_indices = @transform_2, window_bounds = array<i64: 1, 128>}, {pipeline_mode = #tpu.pipeline_mode<synchronous>, transform_indices = @transform_3, window_bounds = array<i64: 128, 128>}, {pipeline_mode = #tpu.pipeline_mode<synchronous>, transform_indices = @transform_4, window_bounds = array<i64: 1, 128>}, {transform_indices = @transform_5, window_bounds = array<i64: 128, 128>}]} {
    %c0 = arith.constant 0 : index
    %c0_0 = arith.constant 0 : index
    %0 = vector.load %arg1[%c0, %c0_0] : memref<128x128xbf16, #tpu.memory_space<vmem>>, vector<128x128xbf16>
    %1 = arith.extf %0 : vector<128x128xbf16> to vector<128x128xf32>
    %c0_1 = arith.constant 0 : index
    %c0_2 = arith.constant 0 : index
    %2 = vector.load %arg2[%c0_1, %c0_2] : memref<1x128xf32, #tpu.memory_space<vmem>>, vector<1x128xf32>
    %3 = vector.broadcast %2 : vector<1x128xf32> to vector<128x128xf32>
    %4 = arith.mulf %1, %3 : vector<128x128xf32>
    %c0_3 = arith.constant 0 : index
    %c0_4 = arith.constant 0 : index
    %5 = vector.load %arg3[%c0_3, %c0_4] : memref<1x128xf32, #tpu.memory_space<vmem>>, vector<1x128xf32>
    %6 = vector.broadcast %5 : vector<1x128xf32> to vector<128x128xf32>
    %7 = arith.addf %4, %6 : vector<128x128xf32>
    %cst = arith.constant 0.000000e+00 : f32
    %8 = vector.broadcast %cst : f32 to vector<128x128xf32>
    %9 = arith.maximumf %7, %8 : vector<128x128xf32>
    %10 = arith.truncf %9 : vector<128x128xf32> to vector<128x128xbf16>
    %c0_5 = arith.constant 0 : index
    %c0_6 = arith.constant 0 : index
    %11 = vector.load %arg4[%c0_5, %c0_6] : memref<128x128xbf16, #tpu.memory_space<vmem>>, vector<128x128xbf16>
    %cst_7 = arith.constant dense<0.000000e+00> : vector<128x128xf32>
    %12 = tpu.matmul %10, %11, %cst_7 {dimension_numbers = #tpu.dot_dimension_numbers<[1], [0], [0], [1], [0, 0, 1, 1], [], []>} : vector<128x128xbf16>, vector<128x128xbf16>, vector<128x128xf32> -> vector<128x128xf32>
    %c0_8 = arith.constant 0 : index
    %c0_9 = arith.constant 0 : index
    %13 = vector.load %arg5[%c0_8, %c0_9] : memref<1x128xf32, #tpu.memory_space<vmem>>, vector<1x128xf32>
    %14 = vector.broadcast %13 : vector<1x128xf32> to vector<128x128xf32>
    %15 = arith.addf %12, %14 : vector<128x128xf32>
    %cst_10 = arith.constant 0.000000e+00 : f32
    %16 = vector.broadcast %cst_10 : f32 to vector<128x128xf32>
    %17 = arith.maximumf %15, %16 : vector<128x128xf32>
    %18 = arith.truncf %17 : vector<128x128xf32> to vector<128x128xbf16>
    %c0_11 = arith.constant 0 : index
    %c0_12 = arith.constant 0 : index
    %19 = vector.load %arg6[%c0_11, %c0_12] : memref<128x128xbf16, #tpu.memory_space<vmem>>, vector<128x128xbf16>
    tpu.vector_store %arg6[%c0_11, %c0_12], %18 {strides = array<i32>} : memref<128x128xbf16, #tpu.memory_space<vmem>>, vector<128x128xbf16>,
    return
  }
  func.func @transform_0(%arg0: i32) -> (i32, i32) {
    %c0_i32 = arith.constant 0 : i32
    %c0_i32_0 = arith.constant 0 : i32
    return %arg0, %c0_i32 : i32, i32
  }
  func.func @transform_1(%arg0: i32) -> (i32, i32) {
    %c0_i32 = arith.constant 0 : i32
    %c0_i32_0 = arith.constant 0 : i32
    %c0_i32_1 = arith.constant 0 : i32
    return %c0_i32, %c0_i32_0 : i32, i32
  }
  func.func @transform_2(%arg0: i32) -> (i32, i32) {
    %c0_i32 = arith.constant 0 : i32
    %c0_i32_0 = arith.constant 0 : i32
    %c0_i32_1 = arith.constant 0 : i32
    return %c0_i32, %c0_i32_0 : i32, i32
  }
  func.func @transform_3(%arg0: i32) -> (i32, i32) {
    %c0_i32 = arith.constant 0 : i32
    %c0_i32_0 = arith.constant 0 : i32
    %c0_i32_1 = arith.constant 0 : i32
    return %c0_i32, %c0_i32_0 : i32, i32
  }
  func.func @transform_4(%arg0: i32) -> (i32, i32) {
    %c0_i32 = arith.constant 0 : i32
    %c0_i32_0 = arith.constant 0 : i32
    %c0_i32_1 = arith.constant 0 : i32
    return %c0_i32, %c0_i32_0 : i32, i32
  }
  func.func @transform_5(%arg0: i32) -> (i32, i32) {
    %c0_i32 = arith.constant 0 : i32
    %c0_i32_0 = arith.constant 0 : i32
    return %arg0, %c0_i32 : i32, i32
  }
}

</mosaic_0001>

<bundles_post_ra>
// kernel: tpu_custom_call.1
= control target key start
LH: loop header
LB: loop body
LE: loop exit
PB: predicated region body
PF: predicated region fallthrough
CT: control target
= control target key end

     0   :  { %10 = vsyncpa [#allocation3], 0  ;;  %s837_s0 = inlined_call_operand.hbm [shape: bf16[128,128], index: 0, kind: input, shape index: {}]   ;;  %s838_s1 = inlined_call_operand.vmem [shape: f32[1,128], index: 1, kind: input, shape index: {}]   ;;  %s839_s2 = inlined_call_operand.vmem [shape: f32[1,128], index: 2, kind: input, shape index: {}]   ;;  %s840_s3 = inlined_call_operand.hbm [shape: bf16[128,128], index: 3, kind: input, shape index: {}]   ;;  %s841_s4 = inlined_call_operand.vmem [shape: f32[1,128], index: 4, kind: input, shape index: {}]   ;;  %s842_s5 = inlined_call_operand.hbm [shape: bf16[128,128], index: 5, kind: output, shape index: {}]  }
   0x1   :  { %11 = vsyncpa [#allocation6], 0 }
   0x2   :  { %12 = vsyncpa [#allocation4], 0  ;;  %s712_s18 = smov [#allocation2]   ;;  %s640_s22 = scalar_lea.hbm %s837_s0, 1024 }
   0x3   :  { %s18_s19 = sshll.u32 %s712_s18, 4  ;;  %p641_p0 = scmp.ne.s32.totalorder %s837_s0, %s640_s22  ;;  %s19_s19 = int_to_ptr.vmem [resolvable:$true] %s18_s19 }
   0x4   :  { %p644_p1 = scmp.lt.u32.totalorder %s640_s22, %s837_s0 }
   0x6   :  { %p646_p2 = pnand %p644_p1, %p641_p0 }
   0x8   :  { %649 = shalt.err (!%p646_p2)
}
   0x9   :  { %s650_s27 = scalar_lea.vmem %s19_s19, 1024  ;;  %p655_p4 = scmp.lt.s32.totalorder %s19_s19, %s19_s19 }
   0xa   :  { %p651_p3 = scmp.ne.s32.totalorder %s19_s19, %s650_s27  ;;  %p656_p5 = scmp.lt.s32.totalorder %s650_s27, %s650_s27 }
   0xc   :  { %p657_p6 = por %p656_p5, %p655_p4 }
   0xe   :  { %p658_p7 = pnand %p657_p6, %p651_p3 }
  0x10   :  { %661 = shalt.err (!%p658_p7)
}
  0x11   :  { %s713_s28 = smov 64   ;;  %s714_s29 = smov 4  }
  0x12   :  { %24 = dma.hbm_to_vmem [thread:$0]  %s837_s0, 1024, %s19_s19, [#allocation3], %s713_s28, %s713_s28, %s714_s29  }
  0x13   :  { %s715_s7 = smov [#allocation5]   ;;  %s662_s11 = scalar_lea.hbm %s840_s3, 1024 }
  0x14   :  { %s34_s8 = sshll.u32 %s715_s7, 4  ;;  %p663_p8 = scmp.ne.s32.totalorder %s840_s3, %s662_s11  ;;  %s35_s8 = int_to_ptr.vmem [resolvable:$true] %s34_s8 }
  0x15   :  { %p666_p9 = scmp.lt.u32.totalorder %s662_s11, %s840_s3 }
  0x17   :  { %p668_p10 = pnand %p666_p9, %p663_p8 }
  0x19   :  { %671 = shalt.err (!%p668_p10)
}
  0x1a   :  { %s672_s16 = scalar_lea.vmem %s35_s8, 1024  ;;  %p677_p12 = scmp.lt.s32.totalorder %s35_s8, %s35_s8 }
  0x1b   :  { %p673_p11 = scmp.ne.s32.totalorder %s35_s8, %s672_s16  ;;  %p678_p13 = scmp.lt.s32.totalorder %s672_s16, %s672_s16 }
  0x1d   :  { %p679_p0 = por %p678_p13, %p677_p12 }
  0x1f   :  { %p680_p1 = pnand %p679_p0, %p673_p11 }
  0x21   :  { %683 = shalt.err (!%p680_p1)
}
  0x22   :  { %40 = dma.hbm_to_vmem [thread:$0]  %s840_s3, 1024, %s35_s8, [#allocation6], %s713_s28, %s713_s28, %s714_s29  }
  0x23   :  { %706 = dma.done.wait [#allocation3], 1024  }
  0x24   :  { %707 = vsyncadd [#allocation3], 4294966272 }
  0x25   :  { %708 = dma.done.wait [#allocation6], 1024  }
  0x26   :  { %709 = vsyncadd [#allocation6], 4294966272  ;;  %v632_v0 = vld [vmem:[#allocation5] sm:$0xff]   ;;  %v633_v1 = vld [vmem:[#allocation5 + $0x8] sm:$0xff]  }
  0x27   :  { %579 = vmatprep.subr.bf16.mxu0 %v632_v0  ;;  %611 = vmatprep.subr.bf16.mxu1 %v632_v0  ;;  %v634_v2 = vld [vmem:[#allocation5 + $0x10] sm:$0xff]   ;;  %v635_v3 = vld [vmem:[#allocation5 + $0x18] sm:$0xff]   ;;  %v478_v4 = vld [vmem:[#allocation2] sm:$0xff]  }
  0x28   :  { %580 = vmatpush3.bf16.msra.mxu0 %v632_v0  ;;  %619 = vmatpush3.bf16.msra.mxu1 %v632_v0  ;;  %v780_v5 = vld [vmem:[%s838_s1] ss:$0 sm:$0xff]  ;;  %v479_v6 = vunpack.c.l.bf16 %v478_v4  ;;  %v480_v7 = vunpack.c.h.bf16 %v478_v4  ;;  %v549_v9 = vld [vmem:[#allocation2 + $0x8] sm:$0xff]   ;;  %v550_v16 = vld [vmem:[#allocation2 + $0x10] sm:$0xff]  }
  0x29   :  { %581 = vmatprep.subr.bf16.mxu0 %v633_v1  ;;  %612 = vmatprep.subr.bf16.mxu1 %v633_v1  ;;  %v552_v8 = vld [vmem:[#allocation2 + $0x20] sm:$0xff]   ;;  %v553_v13 = vld [vmem:[#allocation2 + $0x28] sm:$0xff]   ;;  %v483_v20 = vunpack.c.l.bf16 %v549_v9  ;;  %v484_v21 = vunpack.c.h.bf16 %v549_v9  ;;  %v487_v28 = vunpack.c.l.bf16 %v550_v16  ;;  %v554_v31 = vld [vmem:[#allocation2 + $0x30] sm:$0xff]   ;;  %v488_v40 = vunpack.c.h.bf16 %v550_v16 }
  0x2a   :  { %v785_v10 = vld [vmem:[%s839_s2] ss:$0 sm:$0xff]  ;;  %v495_v11 = vunpack.c.l.bf16 %v552_v8  ;;  %v496_v12 = vunpack.c.h.bf16 %v552_v8  ;;  %v89_v14 = vmul.f32 %v479_v6, %v780_v5  ;;  %v90_v15 = vmul.f32 %v480_v7, %v780_v5  ;;  %v637_v32 = vld [vmem:[#allocation5 + $0x28] sm:$0xff]   ;;  %v551_v44 = vld [vmem:[#allocation2 + $0x18] sm:$0xff]  }
  0x2b   :  { %v636_v17 = vld [vmem:[#allocation5 + $0x20] sm:$0xff]   ;;  %v499_v24 = vunpack.c.l.bf16 %v553_v13  ;;  %v500_v25 = vunpack.c.h.bf16 %v553_v13  ;;  %v91_v35 = vmul.f32 %v483_v20, %v780_v5  ;;  %v92_v36 = vmul.f32 %v484_v21, %v780_v5  ;;  %v555_v47 = vld [vmem:[#allocation2 + $0x38] sm:$0xff]   ;;  %v638_v48 = vld [vmem:[#allocation5 + $0x30] sm:$0xff]  }
  0x2c   :  { %582 = vmatpush3.bf16.msra.mxu0 %v633_v1  ;;  %620 = vmatpush3.bf16.msra.mxu1 %v633_v1  ;;  %v97_v18 = vmul.f32 %v495_v11, %v780_v5  ;;  %v98_v19 = vmul.f32 %v496_v12, %v780_v5  ;;  %v112_v22 = vadd.f32 %v785_v10, %v89_v14  ;;  %v503_v43 = vunpack.c.l.bf16 %v554_v31  ;;  %v639_v63 = vld [vmem:[#allocation5 + $0x38] sm:$0xff]  }
  0x2d   :  { %583 = vmatprep.subr.bf16.mxu0 %v634_v2  ;;  %613 = vmatprep.subr.bf16.mxu1 %v634_v2  ;;  %v113_v23 = vadd.f32 %v785_v10, %v90_v15  ;;  %v99_v38 = vmul.f32 %v499_v24, %v780_v5  ;;  %v100_v39 = vmul.f32 %v500_v25, %v780_v5  ;;  %v504_v46 = vunpack.c.h.bf16 %v554_v31 }
  0x2e   :  { %v120_v26 = vadd.f32 %v785_v10, %v97_v18  ;;  %v121_v27 = vadd.f32 %v785_v10, %v98_v19  ;;  %v128_v29 = vmax.f32 %v112_v22, 0.0  ;;  %v93_v42 = vmul.f32 %v487_v28, %v780_v5 }
  0x2f   :  { %v129_v30 = vmax.f32 %v113_v23, 0.0  ;;  %v94_v45 = vmul.f32 %v488_v40, %v780_v5  ;;  %v114_v49 = vadd.f32 %v785_v10, %v91_v35  ;;  %v115_v50 = vadd.f32 %v785_v10, %v92_v36 }
  0x30   :  { %584 = vmatpush3.bf16.msra.mxu0 %v634_v2  ;;  %621 = vmatpush3.bf16.msra.mxu1 %v634_v2  ;;  %v136_v33 = vmax.f32 %v120_v26, 0.0  ;;  %v137_v34 = vmax.f32 %v121_v27, 0.0  ;;  %v101_v51 = vmul.f32 %v503_v43, %v780_v5  ;;  %v122_v52 = vadd.f32 %v785_v10, %v99_v38 }
  0x31   :  { %585 = vmatprep.subr.bf16.mxu0 %v635_v3  ;;  %614 = vmatprep.subr.bf16.mxu1 %v635_v3  ;;  %v144_v37 = vpack.c.bf16 %v129_v30, %v128_v29  ;;  %v123_v53 = vadd.f32 %v785_v10, %v100_v39  ;;  %v102_v54 = vmul.f32 %v504_v46, %v780_v5  ;;  %v491_v55 = vunpack.c.l.bf16 %v551_v44 }
  0x32   :  { %v148_v41 = vpack.c.bf16 %v137_v34, %v136_v33  ;;  %v116_v56 = vadd.f32 %v785_v10, %v93_v42  ;;  %v492_v57 = vunpack.c.h.bf16 %v551_v44  ;;  %v507_v58 = vunpack.c.l.bf16 %v555_v47 }
  0x33   :  { %595 = vmatprep.mubr.bf16.mxu0 %v144_v37  ;;  %v508_v59 = vunpack.c.h.bf16 %v555_v47  ;;  %v117_v60 = vadd.f32 %v785_v10, %v94_v45  ;;  %v124_v61 = vadd.f32 %v785_v10, %v101_v51  ;;  %v125_v62 = vadd.f32 %v785_v10, %v102_v54 }
  0x34   :  { %586 = vmatpush3.bf16.msra.mxu0 %v635_v3  ;;  %622 = vmatpush3.bf16.msra.mxu1 %v635_v3  ;;  %v130_v0 = vmax.f32 %v114_v49, 0.0  ;;  %v131_v1 = vmax.f32 %v115_v50, 0.0  ;;  %v138_v2 = vmax.f32 %v122_v52, 0.0  ;;  %v139_v3 = vmax.f32 %v123_v53, 0.0 }
  0x35   :  { %587 = vmatprep.subr.bf16.mxu0 %v636_v17  ;;  %615 = vmatprep.subr.bf16.mxu1 %v636_v17  ;;  %v95_v4 = vmul.f32 %v491_v55, %v780_v5  ;;  %v96_v6 = vmul.f32 %v492_v57, %v780_v5  ;;  %v103_v7 = vmul.f32 %v507_v58, %v780_v5  ;;  %v132_v9 = vmax.f32 %v116_v56, 0.0 }
  0x36   :  { %603 = vmatprep.mubr.bf16.mxu1 %v148_v41  ;;  %v104_v8 = vmul.f32 %v508_v59, %v780_v5  ;;  %v133_v11 = vmax.f32 %v117_v60, 0.0  ;;  %v140_v12 = vmax.f32 %v124_v61, 0.0  ;;  %v141_v13 = vmax.f32 %v125_v62, 0.0 }
  0x37   :  { %v145_v14 = vpack.c.bf16 %v131_v1, %v130_v0  ;;  %v149_v15 = vpack.c.bf16 %v139_v3, %v138_v2  ;;  %v118_v16 = vadd.f32 %v785_v10, %v95_v4  ;;  %v126_v18 = vadd.f32 %v785_v10, %v103_v7 }
  0x38   :  { %588 = vmatpush3.bf16.msra.mxu0 %v636_v17  ;;  %623 = vmatpush3.bf16.msra.mxu1 %v636_v17  ;;  %v119_v17 = vadd.f32 %v785_v10, %v96_v6  ;;  %v127_v19 = vadd.f32 %v785_v10, %v104_v8  ;;  %v146_v5 = vpack.c.bf16 %v133_v11, %v132_v9  ;;  %v436_v10 = vld [vmem:[%s841_s4] ss:$0 sm:$0xff]  ;;  %s716_s4 = smov [#allocation7]  }
  0x39   :  { %589 = vmatprep.subr.bf16.mxu0 %v637_v32  ;;  %616 = vmatprep.subr.bf16.mxu1 %v637_v32  ;;  %v150_v20 = vpack.c.bf16 %v141_v13, %v140_v12  ;;  %v134_v21 = vmax.f32 %v118_v16, 0.0  ;;  %v142_v23 = vmax.f32 %v126_v18, 0.0  ;;  %s421_s21 = sshll.u32 %s716_s4, 4  ;;  %s422_s21 = int_to_ptr.vmem [resolvable:$true] %s421_s21 }
  0x3a   :  { %v135_v22 = vmax.f32 %v119_v17, 0.0  ;;  %v143_v24 = vmax.f32 %v127_v19, 0.0  ;;  %s684_s22 = scalar_lea.vmem %s422_s21, 1024  ;;  %p689_p3 = scmp.lt.s32.totalorder %s422_s21, %s422_s21 }
  0x3b   :  { %p685_p2 = scmp.ne.s32.totalorder %s422_s21, %s684_s22  ;;  %p690_p4 = scmp.lt.s32.totalorder %s684_s22, %s684_s22 }
  0x3c   :  { %590 = vmatpush3.bf16.msra.mxu0 %v637_v32  ;;  %624 = vmatpush3.bf16.msra.mxu1 %v637_v32  ;;  %v147_v25 = vpack.c.bf16 %v135_v22, %v134_v21  ;;  %v151_v26 = vpack.c.bf16 %v143_v24, %v142_v23 }
  0x3d   :  { %591 = vmatprep.subr.bf16.mxu0 %v638_v48  ;;  %617 = vmatprep.subr.bf16.mxu1 %v638_v48  ;;  %p691_p5 = por %p690_p4, %p689_p3 }
  0x3f   :  { %p692_p6 = pnand %p691_p5, %p685_p2 }
  0x40   :  { %592 = vmatpush3.bf16.msra.mxu0 %v638_v48  ;;  %625 = vmatpush3.bf16.msra.mxu1 %v638_v48 }
  0x41   :  { %593 = vmatprep.subr.bf16.mxu0 %v639_v63  ;;  %618 = vmatprep.subr.bf16.mxu1 %v639_v63 }
  0x44   :  { %594 = vmatpush3.bf16.msra.mxu0 %v639_v63  ;;  %626 = vmatpush3.bf16.msra.mxu1 %v639_v63 }
  0x47   :  { %596 = vmatmul.mubr.bf16.vlgmr.msra.gmra.mrb[0].mxu0 %v145_v14  ;;  %604 = vmatmul.mubr.bf16.vlgmr.msra.gmra.mrb[0].mxu1 %v149_v15 }
  0x48   :  { %599 = vmatprep.mubr.bf16.mxu0 %v146_v5  ;;  %607 = vmatprep.mubr.bf16.mxu1 %v150_v20 }
  0x4f   :  { %600 = vmatmul.mubr.bf16.gmra.mrb[4].mxu0 %v147_v25  ;;  %608 = vmatmul.mubr.bf16.gmra.mrb[4].mxu1 %v151_v26 }
 0x11a   :  { %v597_v27 = vpop.f32.mrb[0].mxu0  ;;  %v605_v28 = vpop.f32.mrb[0].mxu1 }
 0x11b   :  { %v266_v29 = vadd.f32 %v597_v27, %v436_v10  ;;  %v298_v30 = vadd.f32 %v605_v28, %v436_v10  ;;  %v257_v31 = vpop.f32.mrb[1].mxu0  ;;  %v289_v32 = vpop.f32.mrb[1].mxu1 }
 0x11c   :  { %v258_v33 = vadd.f32 %v436_v10, %v257_v31  ;;  %v290_v34 = vadd.f32 %v436_v10, %v289_v32  ;;  %v598_v35 = vpop.f32.mrb[2].mxu0  ;;  %v606_v36 = vpop.f32.mrb[2].mxu1 }
 0x11d   :  { %v269_v37 = vadd.f32 %v598_v35, %v436_v10  ;;  %v301_v38 = vadd.f32 %v606_v36, %v436_v10  ;;  %v260_v39 = vpop.f32.mrb[3].mxu0  ;;  %v292_v40 = vpop.f32.mrb[3].mxu1  ;;  %v322_v43 = vmax.f32 %v266_v29, 0.0  ;;  %v330_v44 = vmax.f32 %v298_v30, 0.0 }
 0x11e   :  { %v261_v41 = vadd.f32 %v436_v10, %v260_v39  ;;  %v293_v42 = vadd.f32 %v436_v10, %v292_v40  ;;  %v320_v47 = vmax.f32 %v258_v33, 0.0  ;;  %v328_v48 = vmax.f32 %v290_v34, 0.0 }
 0x11f   :  { %v323_v45 = vmax.f32 %v269_v37, 0.0  ;;  %v331_v46 = vmax.f32 %v301_v38, 0.0 }
 0x120   :  { %v321_v49 = vmax.f32 %v261_v41, 0.0  ;;  %v329_v50 = vmax.f32 %v293_v42, 0.0 }
 0x121   :  { %v517_v51 = vpack.c.bf16 %v323_v45, %v322_v43  ;;  %v537_v52 = vpack.c.bf16 %v331_v46, %v330_v44 }
 0x122   :  { %v512_v53 = vpack.c.bf16 %v321_v49, %v320_v47  ;;  %v532_v54 = vpack.c.bf16 %v329_v50, %v328_v48  ;;  %v601_v55 = vpop.f32.mrb[4].mxu0  ;;  %v609_v56 = vpop.f32.mrb[4].mxu1 }
 0x123   :  { %556 = vst [vmem:[#allocation7 + $0x8] sm:$0xff] %v517_v51   ;;  %560 = vst [vmem:[#allocation7 + $0x28] sm:$0xff] %v537_v52   ;;  %v282_v57 = vadd.f32 %v601_v55, %v436_v10  ;;  %v314_v58 = vadd.f32 %v609_v56, %v436_v10  ;;  %v273_v59 = vpop.f32.mrb[5].mxu0  ;;  %v305_v60 = vpop.f32.mrb[5].mxu1 }
 0x124   :  { %513 = vst [vmem:[#allocation7] sm:$0xff] %v512_v53   ;;  %559 = vst [vmem:[#allocation7 + $0x20] sm:$0xff] %v532_v54   ;;  %v274_v61 = vadd.f32 %v436_v10, %v273_v59  ;;  %v306_v62 = vadd.f32 %v436_v10, %v305_v60  ;;  %v602_v63 = vpop.f32.mrb[6].mxu0  ;;  %v610_v0 = vpop.f32.mrb[6].mxu1 }
 0x125   :  { %v285_v1 = vadd.f32 %v602_v63, %v436_v10  ;;  %v317_v2 = vadd.f32 %v610_v0, %v436_v10  ;;  %v276_v3 = vpop.f32.mrb[7].mxu0  ;;  %v308_v4 = vpop.f32.mrb[7].mxu1  ;;  %v326_v8 = vmax.f32 %v282_v57, 0.0  ;;  %v334_v9 = vmax.f32 %v314_v58, 0.0 }
 0x126   :  { %v277_v6 = vadd.f32 %v436_v10, %v276_v3  ;;  %v309_v7 = vadd.f32 %v436_v10, %v308_v4  ;;  %v324_v13 = vmax.f32 %v274_v61, 0.0  ;;  %v332_v14 = vmax.f32 %v306_v62, 0.0 }
 0x127   :  { %v327_v11 = vmax.f32 %v285_v1, 0.0  ;;  %v335_v12 = vmax.f32 %v317_v2, 0.0 }
 0x128   :  { %v325_v15 = vmax.f32 %v277_v6, 0.0  ;;  %v333_v16 = vmax.f32 %v309_v7, 0.0 }
 0x129   :  { %v527_v17 = vpack.c.bf16 %v327_v11, %v326_v8  ;;  %v547_v18 = vpack.c.bf16 %v335_v12, %v334_v9 }
 0x12a   :  { %v522_v19 = vpack.c.bf16 %v325_v15, %v324_v13  ;;  %v542_v5 = vpack.c.bf16 %v333_v16, %v332_v14 }
 0x12b   :  { %558 = vst [vmem:[#allocation7 + $0x18] sm:$0xff] %v527_v17   ;;  %562 = vst [vmem:[#allocation7 + $0x38] sm:$0xff] %v547_v18  }
 0x12c   :  { %557 = vst [vmem:[#allocation7 + $0x10] sm:$0xff] %v522_v19   ;;  %561 = vst [vmem:[#allocation7 + $0x30] sm:$0xff] %v542_v5  }
 0x12d   :  { %695 = shalt.err (!%p692_p6)
}
 0x12e   :  { %s696_s25 = scalar_lea.hbm %s842_s5, 1024 }
 0x12f   :  { %p697_p7 = scmp.ne.s32.totalorder %s842_s5, %s696_s25  ;;  %p700_p8 = scmp.lt.u32.totalorder %s696_s25, %s842_s5 }
 0x131   :  { %p702_p9 = pnand %p700_p8, %p697_p7 }
 0x133   :  { %705 = shalt.err (!%p702_p9)
}
 0x134   :  { %427 = dma.vmem_to_hbm [thread:$0]  %s422_s21, 1024, %s842_s5, [#allocation4], %s713_s28, %s713_s28, %s714_s29  }
 0x135   :  { %710 = dma.done.wait [#allocation4], 1024  }
 0x136   :  { %711 = vsyncadd [#allocation4], 4294966272 }
 0x137   :  { %431 = vsyncpa [#allocation3], 1 }
 0x138   :  { %432 = vsyncpa [#allocation6], 1 }
 0x139   :  { %433 = vsyncpa [#allocation4], 1 }

</bundles_post_ra>
